<compile_context>
chip_gen: v7x
topology: tpu7x:2x2x1
jax: 0.10.0
libtpu: 0.0.40
codegen_flags: <defaults>
</compile_context>

<pallas_src>
import jax
import jax.numpy as jnp
from jax.experimental import pallas as pl
from jax.experimental.pallas import tpu as pltpu


def _round_up(a, m):
    return (a + m - 1) // m * m


def _matvec_sigmoid_kernel(x_ref, w_ref, b_ref, o_ref, acc_ref):
    # x_ref: (1, tk)   w_ref: (N, tk)   b_ref: (N, 1)   o_ref: (N, 1)
    # acc_ref: (N, 1) f32 scratch, resident across the K grid axis.
    k = pl.program_id(0)

    @pl.when(k == 0)
    def _():
        acc_ref[...] = jnp.zeros_like(acc_ref)

    # VPU multiply (x broadcasts over the 10->16 sublanes of w) + XLU
    # lane-reduce over K.  Explicit f32 cast so bf16-stored weights also work
    # on v5e (no bf16 VPU there); it's a no-op for f32 weights.
    w = w_ref[...].astype(jnp.float32)          # (N, tk)
    x = x_ref[...].astype(jnp.float32)          # (1, tk)
    acc_ref[...] += jnp.sum(w * x, axis=-1, keepdims=True)   # (N, 1)

    @pl.when(k == pl.num_programs(0) - 1)
    def _():
        z = acc_ref[...] + b_ref[...].astype(jnp.float32)
        o_ref[...] = jax.nn.sigmoid(z).astype(o_ref.dtype)


# K-tile cap: 16 (padded sublanes) * 4096 lanes * 4 B = 256 KiB per weight
# buffer, 512 KiB double-buffered -- comfortably inside v7x's ~32 MiB scoped
# VMEM while keeping per-step pipeline overhead negligible for large K.
_MAX_TK = 4096


def nn_forward(x, w_nk, b):
    """Pallas equivalent of NN.forward.

    x    : any shape; flattened like PyTorch's x.float().view(-1)
    w_nk : (num_classes, input_size)  -- PyTorch nn.Linear.weight layout,
           ideally already float32 (cast hoisted out of the hot path)
    b    : (num_classes,)
    returns: (num_classes,) float32
    """
    n, k = w_nk.shape

    x_row = x.astype(jnp.float32).reshape(1, k)
    w_nk = w_nk.astype(jnp.float32)            # no-op if caller pre-casts
    b_col = b.astype(jnp.float32).reshape(n, 1)

    # Choose the K tile and pad K (with zeros -> no effect on the dot product)
    # so it divides evenly.  No padding happens for the 2048-wide example.
    k_aligned = _round_up(k, 128)
    tk = min(k_aligned, _MAX_TK)
    k_padded = _round_up(k, tk)
    if k_padded != k:
        x_row = jnp.pad(x_row, ((0, 0), (0, k_padded - k)))
        w_nk = jnp.pad(w_nk, ((0, 0), (0, k_padded - k)))
    num_k_tiles = k_padded // tk

    cost = pl.CostEstimate(
        flops=2 * k_padded * n,
        transcendentals=n,
        bytes_accessed=(k_padded * 4            # x
                        + n * k_padded * 4      # weight (dominant)
                        + n * 4                 # bias
                        + n * 4),               # output
    )

    out = pl.pallas_call(
        _matvec_sigmoid_kernel,
        out_shape=jax.ShapeDtypeStruct((n, 1), jnp.float32),
        grid=(num_k_tiles,),
        in_specs=[
            pl.BlockSpec((1, tk), lambda kk: (0, kk)),   # x tile
            pl.BlockSpec((n, tk), lambda kk: (0, kk)),   # weight tile (N, tk)
            pl.BlockSpec((n, 1), lambda kk: (0, 0)),     # bias (full)
        ],
        out_specs=pl.BlockSpec((n, 1), lambda kk: (0, 0)),  # resident output
        scratch_shapes=[pltpu.VMEM((n, 1), jnp.float32)],   # accumulator
        compiler_params=pltpu.CompilerParams(
            dimension_semantics=("arbitrary",),          # K is a reduction
        ),
        cost_estimate=cost,
    )(x_row, w_nk, b_col)
    return out.reshape(n)


def reference_forward(x, w_nk, b):
    # Pure-JAX reference mirroring the PyTorch forward exactly.
    x_flat = x.astype(jnp.float32).reshape(-1)
    return jax.nn.sigmoid(
        x_flat @ jnp.transpose(w_nk.astype(jnp.float32)) + b.astype(jnp.float32)
    )


if __name__ == "__main__":
    # Shapes consistent with the module: x of shape (2, 4, 16, 16)
    # -> view(-1) gives input_size = 2048; num_classes = 10.
    input_shape = (2, 4, 16, 16)
    input_size = 2 * 4 * 16 * 16
    num_classes = 10

    key = jax.random.PRNGKey(0)
    kx, kw, kb = jax.random.split(key, 3)

    x = jax.random.normal(kx, input_shape, dtype=jnp.float32)

    # Deterministic init mimicking nn.Linear's default U(-1/sqrt(in), 1/sqrt(in)),
    # stored in PyTorch's native (num_classes, input_size) layout.
    bound = 1.0 / jnp.sqrt(jnp.float32(input_size))
    w_nk = jax.random.uniform(kw, (num_classes, input_size), jnp.float32, -bound, bound)
    b = jax.random.uniform(kb, (num_classes,), jnp.float32, -bound, bound)

    out = nn_forward(x, w_nk, b)
    out = jax.block_until_ready(out)

    ref = reference_forward(x, w_nk, b)
    assert out.shape == (num_classes,)
    assert jnp.allclose(out, ref, atol=1e-5, rtol=1e-5), "mismatch vs reference"

    print("KERNEL_OK")
</pallas_src>

<mosaic_0001>
module attributes {stable_mosaic.version = 11 : i64} {
  func.func @_matvec_sigmoid_kernel(%arg0: i32, %arg1: memref<1x2048xf32, #tpu.memory_space<vmem>>, %arg2: memref<10x2048xf32, #tpu.memory_space<vmem>>, %arg3: memref<10x1xf32, #tpu.memory_space<vmem>>, %arg4: memref<10x1xf32, #tpu.memory_space<vmem>>, %arg5: memref<10x1xf32, #tpu.memory_space<vmem>>) attributes {dimension_semantics = [#tpu.dimension_semantics<arbitrary>], iteration_bounds = array<i64: 1>, scalar_prefetch = 0 : i64, scratch_operands = 1 : i64, tpu.core_type = #tpu.core_type<tc>, window_params = [{transform_indices = @transform_0, window_bounds = array<i64: 1, 2048>}, {transform_indices = @transform_1, window_bounds = array<i64: 10, 2048>}, {pipeline_mode = #tpu.pipeline_mode<synchronous>, transform_indices = @transform_2, window_bounds = array<i64: 10, 1>}, {pipeline_mode = #tpu.pipeline_mode<synchronous>, transform_indices = @transform_3, window_bounds = array<i64: 10, 1>}]} {
    %c0_i32 = arith.constant 0 : i32
    %0 = arith.cmpi eq, %arg0, %c0_i32 : i32
    %1 = arith.extui %0 : i1 to i32
    %c0_i32_0 = arith.constant 0 : i32
    %2 = arith.cmpi ne, %1, %c0_i32_0 : i32
    scf.if %2 {
      %cst_10 = arith.constant 0.000000e+00 : f32
      %15 = vector.broadcast %cst_10 : f32 to vector<10x1xf32>
      %c0_11 = arith.constant 0 : index
      %c0_12 = arith.constant 0 : index
      %16 = vector.load %arg5[%c0_11, %c0_12] : memref<10x1xf32, #tpu.memory_space<vmem>>, vector<10x1xf32>
      tpu.vector_store %arg5[%c0_11, %c0_12], %15 {strides = array<i32>} : memref<10x1xf32, #tpu.memory_space<vmem>>, vector<10x1xf32>,
    } else {
    }
    %c0 = arith.constant 0 : index
    %c0_1 = arith.constant 0 : index
    %3 = vector.load %arg2[%c0, %c0_1] : memref<10x2048xf32, #tpu.memory_space<vmem>>, vector<10x2048xf32>
    %c0_2 = arith.constant 0 : index
    %c0_3 = arith.constant 0 : index
    %4 = vector.load %arg1[%c0_2, %c0_3] : memref<1x2048xf32, #tpu.memory_space<vmem>>, vector<1x2048xf32>
    %c0_4 = arith.constant 0 : index
    %c0_5 = arith.constant 0 : index
    %5 = vector.load %arg5[%c0_4, %c0_5] : memref<10x1xf32, #tpu.memory_space<vmem>>, vector<10x1xf32>
    %6 = vector.broadcast %4 : vector<1x2048xf32> to vector<10x2048xf32>
    %7 = arith.mulf %3, %6 : vector<10x2048xf32>
    %cst = arith.constant dense<0.000000e+00> : vector<10xf32>
    %8 = vector.multi_reduction <add>, %7, %cst [1] : vector<10x2048xf32> to vector<10xf32>
    %9 = vector.shape_cast %8 : vector<10xf32> to vector<10x1xf32>
    %10 = arith.addf %5, %9 : vector<10x1xf32>
    %c0_6 = arith.constant 0 : index
    %c0_7 = arith.constant 0 : index
    %11 = vector.load %arg5[%c0_6, %c0_7] : memref<10x1xf32, #tpu.memory_space<vmem>>, vector<10x1xf32>
    tpu.vector_store %arg5[%c0_6, %c0_7], %10 {strides = array<i32>} : memref<10x1xf32, #tpu.memory_space<vmem>>, vector<10x1xf32>,
    %c0_i32_8 = arith.constant 0 : i32
    %12 = arith.cmpi eq, %arg0, %c0_i32_8 : i32
    %13 = arith.extui %12 : i1 to i32
    %c0_i32_9 = arith.constant 0 : i32
    %14 = arith.cmpi ne, %13, %c0_i32_9 : i32
    scf.if %14 {
      %c0_10 = arith.constant 0 : index
      %c0_11 = arith.constant 0 : index
      %15 = vector.load %arg5[%c0_10, %c0_11] : memref<10x1xf32, #tpu.memory_space<vmem>>, vector<10x1xf32>
      %c0_12 = arith.constant 0 : index
      %c0_13 = arith.constant 0 : index
      %16 = vector.load %arg3[%c0_12, %c0_13] : memref<10x1xf32, #tpu.memory_space<vmem>>, vector<10x1xf32>
      %17 = arith.addf %15, %16 : vector<10x1xf32>
      %18 = arith.negf %17 : vector<10x1xf32>
      %19 = math.exp %18 : vector<10x1xf32>
      %cst_14 = arith.constant 1.000000e+00 : f32
      %20 = vector.broadcast %cst_14 : f32 to vector<10x1xf32>
      %21 = arith.addf %20, %19 : vector<10x1xf32>
      %22 = arith.divf %20, %21 : vector<10x1xf32>
      %c0_15 = arith.constant 0 : index
      %c0_16 = arith.constant 0 : index
      %23 = vector.load %arg4[%c0_15, %c0_16] : memref<10x1xf32, #tpu.memory_space<vmem>>, vector<10x1xf32>
      tpu.vector_store %arg4[%c0_15, %c0_16], %22 {strides = array<i32>} : memref<10x1xf32, #tpu.memory_space<vmem>>, vector<10x1xf32>,
    } else {
    }
    return
  }
  func.func @transform_0(%arg0: i32) -> (i32, i32) {
    %c0_i32 = arith.constant 0 : i32
    %c0_i32_0 = arith.constant 0 : i32
    return %c0_i32, %arg0 : i32, i32
  }
  func.func @transform_1(%arg0: i32) -> (i32, i32) {
    %c0_i32 = arith.constant 0 : i32
    %c0_i32_0 = arith.constant 0 : i32
    return %c0_i32, %arg0 : i32, i32
  }
  func.func @transform_2(%arg0: i32) -> (i32, i32) {
    %c0_i32 = arith.constant 0 : i32
    %c0_i32_0 = arith.constant 0 : i32
    %c0_i32_1 = arith.constant 0 : i32
    return %c0_i32, %c0_i32_0 : i32, i32
  }
  func.func @transform_3(%arg0: i32) -> (i32, i32) {
    %c0_i32 = arith.constant 0 : i32
    %c0_i32_0 = arith.constant 0 : i32
    %c0_i32_1 = arith.constant 0 : i32
    return %c0_i32, %c0_i32_0 : i32, i32
  }
}

</mosaic_0001>

<bundles_post_ra>
// kernel: tpu_custom_call.1
= control target key start
LH: loop header
LB: loop body
LE: loop exit
PB: predicated region body
PF: predicated region fallthrough
CT: control target
= control target key end

     0   :  { %8 = vsyncpa [#allocation4], 0  ;;  %s309_s12 = smov [#allocation3]   ;;  %s435_s0 = inlined_call_operand.vmem [shape: f32[1,2048], index: 0, kind: input, shape index: {}]   ;;  %s436_s1 = inlined_call_operand.hbm [shape: f32[10,2048], index: 1, kind: input, shape index: {}]   ;;  %s437_s2 = inlined_call_operand.vmem [shape: f32[10,1], index: 2, kind: input, shape index: {}]   ;;  %s438_s3 = inlined_call_operand.vmem [shape: f32[10,1], index: 3, kind: output, shape index: {}]  }
   0x1   :  { %s16_s13 = sshll.u32 %s309_s12, 4  ;;  %s285_s16 = scalar_lea.hbm %s436_s1, 4096  ;;  %s17_s13 = int_to_ptr.vmem [resolvable:$true] %s16_s13 }
   0x2   :  { %p286_p0 = scmp.ne.s32.totalorder %s436_s1, %s285_s16  ;;  %p289_p1 = scmp.lt.u32.totalorder %s285_s16, %s436_s1 }
   0x4   :  { %p291_p2 = pnand %p289_p1, %p286_p0 }
   0x6   :  { %294 = shalt.err (!%p291_p2)
}
   0x7   :  { %s295_s21 = scalar_lea.vmem %s17_s13, 4096  ;;  %p300_p4 = scmp.lt.s32.totalorder %s17_s13, %s17_s13 }
   0x8   :  { %p296_p3 = scmp.ne.s32.totalorder %s17_s13, %s295_s21  ;;  %p301_p5 = scmp.lt.s32.totalorder %s295_s21, %s295_s21 }
   0xa   :  { %p302_p6 = por %p301_p5, %p300_p4 }
   0xc   :  { %p303_p7 = pnand %p302_p6, %p296_p3 }
   0xe   :  { %306 = shalt.err (!%p303_p7)
}
   0xf   :  { %s310_s22 = smov 2048   ;;  %s311_s23 = smov 128  }
  0x10   :  { %22 = dma.hbm_to_vmem [thread:$0]  %s436_s1, 4096, %s17_s13, [#allocation4], %s310_s22, %s310_s22, %s311_s23  }
  0x11   :  { %307 = dma.done.wait [#allocation4], 4096  }
  0x12   :  { %308 = vsyncadd [#allocation4], 4294963200  ;;  %vm32_vm0 = vcmask 7168   ;;  %v312_v0 = vmov 0.0   ;;  %v74_v1 = vlaneseq  ;;  %v68_v5 = vld [vmem:[%s435_s0] sm:$0xff]  ;;  %v36_v10 = vld [vmem:[#allocation3] sm:$0xff] }
  0x13   :  { %33 = vst.msk [vmem:[#allocation2] sm:$0xff] %vm32_vm0, %v312_v0  ;;  %v37_v11 = vld [vmem:[#allocation3 + $0x8] sm:$0xff]  ;;  %v38_v14 = vld [vmem:[#allocation3 + $0x10] sm:$0xff]  ;;  %v52_v15 = vld [vmem:[#allocation3 + $0x80] sm:$0x3]  ;;  %vm203_vm1 = vcmask 1041408  }
  0x14   :  { %v347_v2 = vshrl.u32 %v74_v1, 7  ;;  %v53_v17 = vld [vmem:[#allocation3 + $0x88] sm:$0x3]  ;;  %v54_v18 = vld [vmem:[#allocation3 + $0x90] sm:$0x3]  ;;  %v39_v21 = vld [vmem:[#allocation3 + $0x18] sm:$0xff] }
  0x15   :  { %v55_v19 = vld [vmem:[#allocation3 + $0x98] sm:$0x3]  ;;  %v56_v24 = vld [vmem:[#allocation3 + $0xa0] sm:$0x3]  ;;  %v57_v33 = vld [vmem:[#allocation3 + $0xa8] sm:$0x3] }
  0x16   :  { %v76_v3 = vsub.s32 0, %v347_v2  ;;  %v80_v4 = vsub.s32 1, %v347_v2  ;;  %v84_v6 = vsub.s32 2, %v347_v2  ;;  %v88_v7 = vsub.s32 3, %v347_v2  ;;  %v40_v32 = vld [vmem:[#allocation3 + $0x20] sm:$0xff]  ;;  %v41_v41 = vld [vmem:[#allocation3 + $0x28] sm:$0xff] }
  0x17   :  { %v92_v13 = vsub.s32 4, %v347_v2  ;;  %v96_v16 = vsub.s32 5, %v347_v2  ;;  %v100_v26 = vsub.s32 6, %v347_v2  ;;  %v104_v35 = vsub.s32 7, %v347_v2  ;;  %v58_v42 = vld [vmem:[#allocation3 + $0xb0] sm:$0x3] }
  0x18   :  { %v77_v8 = vrot.slane %v68_v5, %v76_v3  ;;  %v81_v9 = vrot.slane %v68_v5, %v80_v4  ;;  %v85_v12 = vrot.slane %v68_v5, %v84_v6  ;;  %v89_v20 = vrot.slane %v68_v5, %v88_v7  ;;  %v378_v46 = vld [vmem:[%s435_s0 + $0x8] sm:$0xff]  ;;  %v42_v51 = vld [vmem:[#allocation3 + $0x30] sm:$0xff]  ;;  %v60_v60 = vld [vmem:[#allocation3 + $0xc0] sm:$0x3] }
  0x19   :  { %v93_v25 = vrot.slane %v68_v5, %v92_v13  ;;  %v97_v34 = vrot.slane %v68_v5, %v96_v16  ;;  %v101_v43 = vrot.slane %v68_v5, %v100_v26  ;;  %v59_v52 = vld [vmem:[#allocation3 + $0xb8] sm:$0x3]  ;;  %v105_v53 = vrot.slane %v68_v5, %v104_v35 }
  0x1a   :  { %v154_v22 = vmul.f32 %v77_v8, %v36_v10  ;;  %v155_v23 = vmul.f32 %v81_v9, %v37_v11  ;;  %v156_v27 = vmul.f32 %v85_v12, %v38_v14  ;;  %v170_v28 = vmul.f32 %v77_v8, %v52_v15  ;;  %v43_v59 = vld [vmem:[#allocation3 + $0x38] sm:$0xff]  ;;  %v44_v10 = vld [vmem:[#allocation3 + $0x40] sm:$0xff] }
  0x1b   :  { %v171_v29 = vmul.f32 %v81_v9, %v53_v17  ;;  %v172_v30 = vmul.f32 %v85_v12, %v54_v18  ;;  %v173_v31 = vmul.f32 %v89_v20, %v55_v19  ;;  %v157_v36 = vmul.f32 %v89_v20, %v39_v21  ;;  %v61_v12 = vld [vmem:[#allocation3 + $0xc8] sm:$0x3]  ;;  %v62_v21 = vld [vmem:[#allocation3 + $0xd0] sm:$0x3] }
  0x1c   :  { %v174_v37 = vmul.f32 %v93_v25, %v56_v24  ;;  %v186_v38 = vadd.f32 %v155_v23, %v154_v22  ;;  %v204_v39 = vsel %vm203_vm1, %v170_v28, 0.0  ;;  %v158_v47 = vmul.f32 %v93_v25, %v40_v32  ;;  %v45_v19 = vld [vmem:[#allocation3 + $0x48] sm:$0xff] }
  0x1d   :  { %v205_v40 = vsel %vm203_vm1, %v171_v29, 0.0  ;;  %v207_v45 = vsel %vm203_vm1, %v172_v30, 0.0  ;;  %v175_v48 = vmul.f32 %v97_v34, %v57_v33  ;;  %v209_v50 = vsel %vm203_vm1, %v173_v31, 0.0  ;;  %v63_v29 = vld [vmem:[#allocation3 + $0xd8] sm:$0x3] }
  0x1e   :  { %v206_v44 = vadd.f32 %v205_v40, %v204_v39  ;;  %v187_v49 = vadd.f32 %v186_v38, %v156_v27  ;;  %v159_v55 = vmul.f32 %v97_v34, %v41_v41  ;;  %v176_v56 = vmul.f32 %v101_v43, %v58_v42 }
  0x1f   :  { %v211_v58 = vsel %vm203_vm1, %v174_v37, 0.0  ;;  %v109_v61 = vrot.slane %v378_v46, %v76_v3  ;;  %v160_v63 = vmul.f32 %v101_v43, %v42_v51  ;;  %v177_v1 = vmul.f32 %v105_v53, %v59_v52  ;;  %v64_v37 = vld [vmem:[#allocation3 + $0xe0] sm:$0x3]  ;;  %v66_v51 = vld [vmem:[#allocation3 + $0xf0] sm:$0x3] }
  0x20   :  { %v208_v54 = vadd.f32 %v207_v45, %v206_v44  ;;  %v188_v57 = vadd.f32 %v187_v49, %v157_v36  ;;  %v213_v9 = vsel %vm203_vm1, %v175_v48, 0.0  ;;  %v113_v5 = vrot.slane %v378_v46, %v80_v4  ;;  %v46_v4 = vld [vmem:[#allocation3 + $0x50] sm:$0xff]  ;;  %v65_v44 = vld [vmem:[#allocation3 + $0xe8] sm:$0x3] }
  0x21   :  { %v161_v14 = vmul.f32 %v105_v53, %v43_v59  ;;  %v178_v15 = vmul.f32 %v109_v61, %v60_v60  ;;  %v215_v18 = vsel %vm203_vm1, %v176_v56, 0.0  ;;  %v117_v3 = vrot.slane %v378_v46, %v84_v6  ;;  %v47_v6 = vld [vmem:[#allocation3 + $0x58] sm:$0xff] }
  0x22   :  { %v210_v62 = vadd.f32 %v209_v50, %v208_v54  ;;  %v189_v8 = vadd.f32 %v188_v57, %v158_v47  ;;  %v162_v22 = vmul.f32 %v109_v61, %v44_v10  ;;  %v217_v24 = vsel %vm203_vm1, %v177_v1, 0.0  ;;  %v67_v61 = vld [vmem:[#allocation3 + $0xf8] sm:$0x3] }
  0x23   :  { %v179_v25 = vmul.f32 %v113_v5, %v61_v12  ;;  %v121_v27 = vrot.slane %v378_v46, %v88_v7  ;;  %v163_v30 = vmul.f32 %v113_v5, %v45_v19  ;;  %v219_v32 = vsel %vm203_vm1, %v178_v15, 0.0  ;;  %v48_v7 = vld [vmem:[#allocation3 + $0x60] sm:$0xff] }
  0x24   :  { %v212_v11 = vadd.f32 %v211_v58, %v210_v62  ;;  %v190_v17 = vadd.f32 %v189_v8, %v159_v55  ;;  %v180_v33 = vmul.f32 %v117_v3, %v62_v21  ;;  %v125_v34 = vrot.slane %v378_v46, %v92_v13  ;;  %v49_v13 = vld [vmem:[#allocation3 + $0x68] sm:$0xff] }
  0x25   :  { %v164_v38 = vmul.f32 %v117_v3, %v46_v4  ;;  %v181_v40 = vmul.f32 %v121_v27, %v63_v29  ;;  %v221_v41 = vsel %vm203_vm1, %v179_v25, 0.0  ;;  %v129_v42 = vrot.slane %v378_v46, %v96_v16  ;;  %v50_v16 = vld [vmem:[#allocation3 + $0x70] sm:$0xff] }
  0x26   :  { %v214_v20 = vadd.f32 %v213_v9, %v212_v11  ;;  %v191_v23 = vadd.f32 %v190_v17, %v160_v63  ;;  %v165_v45 = vmul.f32 %v121_v27, %v47_v6  ;;  %v182_v48 = vmul.f32 %v125_v34, %v64_v37  ;;  %v70_v3 = vld [vmem:[#allocation2] sm:$0xff] }
  0x27   :  { %v223_v49 = vsel %vm203_vm1, %v180_v33, 0.0  ;;  %v133_v50 = vrot.slane %v378_v46, %v100_v26  ;;  %v166_v53 = vmul.f32 %v125_v34, %v48_v7  ;;  %v183_v55 = vmul.f32 %v129_v42, %v65_v44  ;;  %v51_v26 = vld [vmem:[#allocation3 + $0x78] sm:$0xff]  ;;  %v248_v25 = vld [vmem:[%s437_s2] sm:$0xff] }
  0x28   :  { %v216_v28 = vadd.f32 %v215_v18, %v214_v20  ;;  %v192_v31 = vadd.f32 %v191_v23, %v161_v14  ;;  %v225_v56 = vsel %vm203_vm1, %v181_v40, 0.0  ;;  %v137_v57 = vrot.slane %v378_v46, %v104_v35 }
  0x29   :  { %v167_v59 = vmul.f32 %v129_v42, %v49_v13  ;;  %v184_v62 = vmul.f32 %v133_v50, %v66_v51  ;;  %v227_v63 = vsel %vm203_vm1, %v182_v48, 0.0  ;;  %v168_v8 = vmul.f32 %v133_v50, %v50_v16 }
  0x2a   :  { %v218_v36 = vadd.f32 %v217_v24, %v216_v28  ;;  %v193_v39 = vadd.f32 %v192_v31, %v162_v22  ;;  %v229_v10 = vsel %vm203_vm1, %v183_v55, 0.0  ;;  %v185_v5 = vmul.f32 %v137_v57, %v67_v61 }
  0x2b   :  { %v169_v12 = vmul.f32 %v137_v57, %v51_v26  ;;  %v231_v2 = vsel %vm203_vm1, %v184_v62, 0.0  ;;  %vm34_vm2 = vcmask 1024  }
  0x2c   :  { %v220_v43 = vadd.f32 %v219_v32, %v218_v36  ;;  %v194_v47 = vadd.f32 %v193_v39, %v163_v30  ;;  %v233_v17 = vsel %vm203_vm1, %v185_v5, 0.0  ;;  %35 = vst.msk [vmem:[#allocation2 + $0x8] sm:$0x3] %vm34_vm2, %v312_v0  ;;  %v249_v0 = vld [vmem:[%s437_s2 + $0x8] sm:$0x3] }
  0x2e   :  { %v222_v52 = vadd.f32 %v221_v41, %v220_v43  ;;  %v195_v54 = vadd.f32 %v194_v47, %v164_v38 }
  0x30   :  { %v224_v58 = vadd.f32 %v223_v49, %v222_v52  ;;  %v196_v60 = vadd.f32 %v195_v54, %v165_v45 }
  0x32   :  { %v226_v1 = vadd.f32 %v225_v56, %v224_v58  ;;  %v197_v9 = vadd.f32 %v196_v60, %v166_v53 }
  0x33   :  { %v71_v22 = vld [vmem:[#allocation2 + $0x8] sm:$0x3] }
  0x34   :  { %v228_v11 = vadd.f32 %v227_v63, %v226_v1  ;;  %v198_v14 = vadd.f32 %v197_v9, %v167_v59 }
  0x36   :  { %v230_v35 = vadd.f32 %v229_v10, %v228_v11  ;;  %v199_v46 = vadd.f32 %v198_v14, %v168_v8 }
  0x38   :  { %v232_v15 = vadd.f32 %v231_v2, %v230_v35  ;;  %v200_v18 = vadd.f32 %v199_v46, %v169_v12 }
  0x3a   :  { %201 = vadd.xlane.f32.xlu0 %v200_v18  ;;  %v234_v19 = vadd.f32 %v233_v17, %v232_v15 }
  0x3e   :  { %235 = vadd.xlane.f32.xlu0 %v234_v19 }
  0xc7   :  { %v202_v20 = vpop.xlane.xlu0 %201 }
  0xc8   :  { %v237_v21 = vadd.f32 %v202_v20, %v70_v3 }
  0xca   :  { %240 = vst.msk [vmem:[#allocation2] sm:$0xff] %vm32_vm0, %v237_v21 }
  0xcb   :  { %v236_v23 = vpop.xlane.xlu0 %235 }
  0xcc   :  { %v238_v24 = vadd.f32 %v236_v23, %v71_v22 }
  0xce   :  { %242 = vst.msk [vmem:[#allocation2 + $0x8] sm:$0x3] %vm34_vm2, %v238_v24 }
  0xd1   :  { %v246_v4 = vld [vmem:[#allocation2] sm:$0xff] }
  0xd2   :  { %v250_v27 = vadd.f32 %v248_v25, %v246_v4 }
  0xd4   :  { %v271_v28 = vmul.f32 -1.442695, %v250_v27 }
  0xd5   :  { %v247_v29 = vld [vmem:[#allocation2 + $0x8] sm:$0x3] }
  0xd6   :  { %277 = vpow2.f32 %v271_v28  ;;  %v251_v30 = vadd.f32 %v249_v0, %v247_v29 }
  0xd8   :  { %v272_v31 = vmul.f32 -1.442695, %v251_v30 }
  0xda   :  { %279 = vpow2.f32 %v272_v31 }
  0xe0   :  { %v278_v32 = vpop.eup %277 }
  0xe1   :  { %v258_v33 = vadd.f32 1.0, %v278_v32 }
  0xe3   :  { %281 = vrcp.f32 %v258_v33 }
  0xe4   :  { %v280_v6 = vpop.eup %279 }
  0xe5   :  { %v259_v34 = vadd.f32 1.0, %v280_v6 }
  0xe7   :  { %283 = vrcp.f32 %v259_v34 }
  0xed   :  { %v282_v36 = vpop.eup %281 }
  0xee   :  { %264 = vst.msk [vmem:[%s438_s3] sm:$0xff] %vm32_vm0, %v282_v36 }
  0xf1   :  { %v284_v37 = vpop.eup %283 }
  0xf2   :  { %265 = vst.msk [vmem:[%s438_s3 + $0x8] sm:$0x3] %vm34_vm2, %v284_v37 }
  0xf3   :  { %270 = vsyncpa [#allocation4], 1 }

</bundles_post_ra>
